<compile_context>
chip_gen: v5e
topology: v5e:2x2
jax: 0.10.0
libtpu: 0.0.40
codegen_flags: <defaults>
</compile_context>

<pallas_src>
import string
import math

import jax
import jax.numpy as jnp
import numpy as np
from jax.experimental import pallas as pl
from jax.experimental.pallas import tpu as pltpu


# ----------------------------- Pallas kernel --------------------------------
def gru_seq_kernel(x_ref, h0_ref,
                   wih_ref, whh_ref, bih_ref, bhh_ref,
                   wlin_ref, blin_ref,
                   logp_ref, hn_ref,
                   gi_ref, h_ref):
    """GRU recurrence over the full sequence + per-step Linear + LogSoftmax.

    grid = (L,)  -- one grid step per character.

    x_ref   : (L*B, I)   bf16  one-hot inputs, all timesteps (VMEM resident)
    h0_ref  : (B, H)     f32   initial hidden state
    wih_ref : (I, 3H)    bf16  input->gates weights (transposed, gates r|z|n)
    whh_ref : (H, 3H)    bf16  hidden->gates weights (transposed)
    bih_ref : (1, 3H)    f32
    bhh_ref : (1, 3H)    f32
    wlin_ref: (H, Op)    bf16  classifier weights (transposed, O padded to 128)
    blin_ref: (1, Op)    f32   padded lanes hold -1e30 so they vanish in softmax
    logp_ref: (1, B, Op) f32   per-timestep log-softmax output block
    hn_ref  : (B, H)     f32   final hidden state (constant block index)
    gi_ref  : (L*B, 3H)  f32   scratch: cached input projections, all timesteps
    h_ref   : (B, H)     f32   scratch: recurrent hidden-state carrier
    """
    t = pl.program_id(0)
    B, H = h_ref.shape

    @pl.when(t == 0)
    def _init():
        # One batched MXU matmul for every timestep's input projection
        # (x is one-hot, so the bf16 cast is exact).
        gi_ref[...] = (
            jnp.dot(x_ref[...], wih_ref[...],
                    preferred_element_type=jnp.float32)
            + bih_ref[...])
        h_ref[...] = h0_ref[...]

    h = h_ref[...]                                    # (B, H) f32
    row0 = pl.multiple_of(t * B, B)                   # B is a multiple of 8
    gi = gi_ref[pl.ds(row0, B), :]                    # (B, 3H) f32

    gh = (jnp.dot(h.astype(whh_ref.dtype), whh_ref[...],
                  preferred_element_type=jnp.float32)
          + bhh_ref[...])                             # (B, 3H) f32

    # PyTorch GRU gate order: r, z, n.  H == 128 keeps these lane slices
    # aligned; other H values stay correct but would relayout.
    r = jax.nn.sigmoid(gi[:, 0 * H:1 * H] + gh[:, 0 * H:1 * H])
    z = jax.nn.sigmoid(gi[:, 1 * H:2 * H] + gh[:, 1 * H:2 * H])
    n = jnp.tanh(gi[:, 2 * H:3 * H] + r * gh[:, 2 * H:3 * H])
    h_new = (1.0 - z) * n + z * h                     # f32 elementwise (v5e OK)

    h_ref[...] = h_new
    hn_ref[...] = h_new                               # VMEM-resident; HBM writeback once

    # Per-step classifier + LogSoftmax (dim=-1); Op = 128 -> lane-dense store.
    logits = (jnp.dot(h_new.astype(wlin_ref.dtype), wlin_ref[...],
                      preferred_element_type=jnp.float32)
              + blin_ref[...])                        # (B, Op) f32
    m = jnp.max(logits, axis=-1, keepdims=True)
    lse = jnp.log(jnp.sum(jnp.exp(logits - m), axis=-1, keepdims=True)) + m
    logp_ref[0] = logits - lse


# ------------------------------ Wrappers --------------------------------------
def _gru_seq_padded(x_seq, hidden, packed):
    """Run the whole sequence in one pallas_call; returns padded outputs."""
    L, B, I = x_seq.shape
    H = hidden.shape[-1]
    H3 = packed["w_hh_t"].shape[-1]
    Op = packed["w_lin_t"].shape[-1]
    Bp = ((B + 7) // 8) * 8                      # pad batch to >= 8 sublanes

    x_p = jnp.zeros((L, Bp, I), jnp.bfloat16)
    x_p = x_p.at[:, :B, :].set(x_seq.astype(jnp.bfloat16))
    x_flat = x_p.reshape(L * Bp, I)
    h0_p = jnp.zeros((Bp, H), jnp.float32).at[:B, :].set(
        hidden[0].astype(jnp.float32))

    const2 = lambda t: (0, 0)
    cost = pl.CostEstimate(
        flops=int(2 * L * Bp * I * H3
                  + L * (2 * Bp * H * H3 + 2 * Bp * H * Op)
                  + L * Bp * 12 * H),
        transcendentals=int(L * Bp * (3 * H + Op)),
        bytes_accessed=int(x_flat.size * 2 + h0_p.size * 4
                           + packed["w_ih_t"].size * 2
                           + packed["w_hh_t"].size * 2
                           + packed["w_lin_t"].size * 2
                           + packed["b_ih"].size * 4
                           + packed["b_hh"].size * 4
                           + packed["b_lin"].size * 4
                           + L * Bp * Op * 4 + Bp * H * 4),
    )

    logp_pad, hn_pad = pl.pallas_call(
        gru_seq_kernel,
        out_shape=(
            jax.ShapeDtypeStruct((L, Bp, Op), jnp.float32),
            jax.ShapeDtypeStruct((Bp, H), jnp.float32),
        ),
        grid_spec=pltpu.PrefetchScalarGridSpec(
            num_scalar_prefetch=0,
            grid=(L,),
            in_specs=[
                pl.BlockSpec((L * Bp, I), const2),   # x (all timesteps, resident)
                pl.BlockSpec((Bp, H), const2),       # h0
                pl.BlockSpec((I, H3), const2),       # W_ih^T   (resident)
                pl.BlockSpec((H, H3), const2),       # W_hh^T   (resident)
                pl.BlockSpec((1, H3), const2),       # b_ih
                pl.BlockSpec((1, H3), const2),       # b_hh
                pl.BlockSpec((H, Op), const2),       # W_lin^T  (resident, padded)
                pl.BlockSpec((1, Op), const2),       # b_lin    (padded)
            ],
            out_specs=(
                pl.BlockSpec((1, Bp, Op), lambda t: (t, 0, 0)),
                pl.BlockSpec((Bp, H), const2),
            ),
            scratch_shapes=[
                pltpu.VMEM((L * Bp, H3), jnp.float32),   # cached input projection
                pltpu.VMEM((Bp, H), jnp.float32),        # hidden-state carrier
            ],
        ),
        compiler_params=pltpu.CompilerParams(
            dimension_semantics=("arbitrary",)),
        cost_estimate=cost,
    )(x_flat, h0_p,
      packed["w_ih_t"], packed["w_hh_t"], packed["b_ih"], packed["b_hh"],
      packed["w_lin_t"], packed["b_lin"])
    return logp_pad, hn_pad


_gru_seq_padded_jit = jax.jit(_gru_seq_padded)


def gru_sequence_forward(x_seq, hidden, packed, output_size):
    """GRU over a (L, B, I) sequence -> (log_probs (L, B, O), hn (1, B, H))."""
    L, B, _ = x_seq.shape
    H = hidden.shape[-1]
    logp_pad, hn_pad = _gru_seq_padded_jit(x_seq, hidden, packed)
    return logp_pad[:, :B, :output_size], hn_pad[:B].reshape(1, B, H)


def gru_forward(x, hidden, packed, output_size):
    """Mirrors GRU.forward(input, hidden): x (B, I) -> ((1, B, O), (1, B, H))."""
    return gru_sequence_forward(x[None], hidden, packed, output_size)


# ------------------------------ Parameters ------------------------------------
def init_params(key, input_size, hidden_size, output_size):
    """PyTorch-shaped f32 parameters, uniform(-1/sqrt(H), 1/sqrt(H))."""
    keys = jax.random.split(key, 6)
    k = 1.0 / math.sqrt(hidden_size)
    u = lambda kk, shape: jax.random.uniform(
        kk, shape, minval=-k, maxval=k, dtype=jnp.float32)
    return {
        "w_ih": u(keys[0], (3 * hidden_size, input_size)),   # weight_ih_l0
        "w_hh": u(keys[1], (3 * hidden_size, hidden_size)),  # weight_hh_l0
        "b_ih": u(keys[2], (3 * hidden_size,)),
        "b_hh": u(keys[3], (3 * hidden_size,)),
        "w_lin": u(keys[4], (output_size, hidden_size)),     # nn.Linear weight
        "b_lin": u(keys[5], (output_size,)),
    }


def pack_params(p, output_size):
    """Kernel layout: transposed, bf16 matmul operands, classifier padded to a
    128-lane-dense output (padded logits forced to -1e30 so softmax ignores them)."""
    H = p["w_hh"].shape[-1]
    Op = max(128, ((output_size + 127) // 128) * 128)
    w_lin_pad = jnp.zeros((H, Op), jnp.float32).at[:, :output_size].set(
        p["w_lin"].T)
    b_lin_pad = jnp.full((1, Op), -1e30, jnp.float32).at[0, :output_size].set(
        p["b_lin"])
    return {
        "w_ih_t": p["w_ih"].T.astype(jnp.bfloat16),   # (I, 3H)
        "w_hh_t": p["w_hh"].T.astype(jnp.bfloat16),   # (H, 3H)
        "b_ih": p["b_ih"].reshape(1, -1),             # (1, 3H) f32
        "b_hh": p["b_hh"].reshape(1, -1),             # (1, 3H) f32
        "w_lin_t": w_lin_pad.astype(jnp.bfloat16),    # (H, Op)
        "b_lin": b_lin_pad,                           # (1, Op) f32
    }


# ------------------------------ Helpers / reference ---------------------------
def line_to_tensor(line, all_letters):
    """JAX equivalent of lineToTensor: (len(line), 1, n_letters) one-hot."""
    n_letters = len(all_letters)
    idx = jnp.array([all_letters.find(c) for c in line], dtype=jnp.int32)
    return jax.nn.one_hot(idx, n_letters, dtype=jnp.float32).reshape(
        len(line), 1, n_letters)


def gru_reference(x_seq, hidden, p):
    """Pure-JAX f32 reference matching PyTorch nn.GRU + Linear + LogSoftmax."""
    H = p["w_hh"].shape[-1]
    h = hidden[0]
    outs = []
    for t in range(x_seq.shape[0]):
        gi = x_seq[t] @ p["w_ih"].T + p["b_ih"]
        gh = h @ p["w_hh"].T + p["b_hh"]
        r = jax.nn.sigmoid(gi[:, :H] + gh[:, :H])
        z = jax.nn.sigmoid(gi[:, H:2 * H] + gh[:, H:2 * H])
        n = jnp.tanh(gi[:, 2 * H:] + r * gh[:, 2 * H:])
        h = (1.0 - z) * n + z * h
        logits = h @ p["w_lin"].T + p["b_lin"]
        outs.append(jax.nn.log_softmax(logits, axis=-1))
    return jnp.stack(outs), h[None]


if __name__ == "__main__":
    all_letters = string.ascii_letters + ".,;'"
    n_letters = len(all_letters)          # 56

    input_size = n_letters
    hidden_size = 128                      # n_hidden in the PyTorch script
    output_size = 8                        # small synthetic category count
    batch = 1

    key = jax.random.PRNGKey(0)
    params = init_params(key, input_size, hidden_size, output_size)
    packed = pack_params(params, output_size)

    # ---- whole line in ONE kernel launch (in-kernel recurrence over 'Bai') ----
    line = 'Bai'
    x_seq = line_to_tensor(line, all_letters)                  # (3, 1, 56)
    hidden0 = jnp.zeros((1, batch, hidden_size), jnp.float32)

    log_probs, hn = gru_sequence_forward(x_seq, hidden0, packed, output_size)
    jax.block_until_ready((log_probs, hn))

    assert log_probs.shape == (len(line), batch, output_size)
    assert hn.shape == (1, batch, hidden_size)

    ref_logp, ref_hn = gru_reference(x_seq, hidden0, params)
    assert np.allclose(np.asarray(log_probs), np.asarray(ref_logp),
                       atol=5e-2), "log-softmax mismatch vs f32 reference"
    assert np.allclose(np.asarray(hn), np.asarray(ref_hn),
                       atol=5e-2), "hidden state mismatch vs f32 reference"
    assert np.allclose(np.asarray(jnp.sum(jnp.exp(log_probs), axis=-1)),
                       1.0, atol=1e-4)

    # ---- original module usage: forward(lineToTensor('B').squeeze(0), hidden) ----
    x1 = line_to_tensor('B', all_letters)[0]                   # (1, 56)
    lp1, hn1 = gru_forward(x1, hidden0, packed, output_size)
    jax.block_until_ready((lp1, hn1))
    assert lp1.shape == (1, batch, output_size)
    assert hn1.shape == (1, batch, hidden_size)
    assert np.allclose(np.asarray(lp1), np.asarray(ref_logp[:1]), atol=5e-2)

    print("KERNEL_OK")
</pallas_src>

<mosaic_0001>
module attributes {stable_mosaic.version = 11 : i64} {
  func.func @gru_seq_kernel(%arg0: i32, %arg1: memref<24x56xbf16, #tpu.memory_space<vmem>>, %arg2: memref<8x128xf32, #tpu.memory_space<vmem>>, %arg3: memref<56x384xbf16, #tpu.memory_space<vmem>>, %arg4: memref<128x384xbf16, #tpu.memory_space<vmem>>, %arg5: memref<1x384xf32, #tpu.memory_space<vmem>>, %arg6: memref<1x384xf32, #tpu.memory_space<vmem>>, %arg7: memref<128x128xbf16, #tpu.memory_space<vmem>>, %arg8: memref<1x128xf32, #tpu.memory_space<vmem>>, %arg9: memref<1x8x128xf32, #tpu.memory_space<vmem>>, %arg10: memref<8x128xf32, #tpu.memory_space<vmem>>, %arg11: memref<24x384xf32, #tpu.memory_space<vmem>>, %arg12: memref<8x128xf32, #tpu.memory_space<vmem>>) attributes {dimension_semantics = [#tpu.dimension_semantics<arbitrary>], iteration_bounds = array<i64: 3>, scalar_prefetch = 0 : i64, scratch_operands = 2 : i64, tpu.core_type = #tpu.core_type<tc>, window_params = [{pipeline_mode = #tpu.pipeline_mode<synchronous>, transform_indices = @transform_0, window_bounds = array<i64: 24, 56>}, {pipeline_mode = #tpu.pipeline_mode<synchronous>, transform_indices = @transform_1, window_bounds = array<i64: 8, 128>}, {pipeline_mode = #tpu.pipeline_mode<synchronous>, transform_indices = @transform_2, window_bounds = array<i64: 56, 384>}, {pipeline_mode = #tpu.pipeline_mode<synchronous>, transform_indices = @transform_3, window_bounds = array<i64: 128, 384>}, {pipeline_mode = #tpu.pipeline_mode<synchronous>, transform_indices = @transform_4, window_bounds = array<i64: 1, 384>}, {pipeline_mode = #tpu.pipeline_mode<synchronous>, transform_indices = @transform_5, window_bounds = array<i64: 1, 384>}, {pipeline_mode = #tpu.pipeline_mode<synchronous>, transform_indices = @transform_6, window_bounds = array<i64: 128, 128>}, {pipeline_mode = #tpu.pipeline_mode<synchronous>, transform_indices = @transform_7, window_bounds = array<i64: 1, 128>}, {transform_indices = @transform_8, window_bounds = array<i64: 1, 8, 128>}, {pipeline_mode = #tpu.pipeline_mode<synchronous>, transform_indices = @transform_9, window_bounds = array<i64: 8, 128>}]} {
    %c0_i32 = arith.constant 0 : i32
    %0 = arith.cmpi eq, %arg0, %c0_i32 : i32
    %1 = arith.extui %0 : i1 to i32
    %c0_i32_0 = arith.constant 0 : i32
    %2 = arith.cmpi ne, %1, %c0_i32_0 : i32
    scf.if %2 {
      %c0_24 = arith.constant 0 : index
      %c0_25 = arith.constant 0 : index
      %62 = vector.load %arg1[%c0_24, %c0_25] : memref<24x56xbf16, #tpu.memory_space<vmem>>, vector<24x56xbf16>
      %c0_26 = arith.constant 0 : index
      %c0_27 = arith.constant 0 : index
      %63 = vector.load %arg3[%c0_26, %c0_27] : memref<56x384xbf16, #tpu.memory_space<vmem>>, vector<56x384xbf16>
      %cst_28 = arith.constant dense<0.000000e+00> : vector<24x384xf32>
      %64 = tpu.matmul %62, %63, %cst_28 {dimension_numbers = #tpu.dot_dimension_numbers<[1], [0], [0], [1], [0, 0, 1, 1], [], []>} : vector<24x56xbf16>, vector<56x384xbf16>, vector<24x384xf32> -> vector<24x384xf32>
      %c0_29 = arith.constant 0 : index
      %c0_30 = arith.constant 0 : index
      %65 = vector.load %arg5[%c0_29, %c0_30] : memref<1x384xf32, #tpu.memory_space<vmem>>, vector<1x384xf32>
      %66 = vector.broadcast %65 : vector<1x384xf32> to vector<24x384xf32>
      %67 = arith.addf %64, %66 : vector<24x384xf32>
      %c0_31 = arith.constant 0 : index
      %c0_32 = arith.constant 0 : index
      %68 = vector.load %arg11[%c0_31, %c0_32] : memref<24x384xf32, #tpu.memory_space<vmem>>, vector<24x384xf32>
      tpu.vector_store %arg11[%c0_31, %c0_32], %67 {strides = array<i32>} : memref<24x384xf32, #tpu.memory_space<vmem>>, vector<24x384xf32>,
      %c0_33 = arith.constant 0 : index
      %c0_34 = arith.constant 0 : index
      %69 = vector.load %arg2[%c0_33, %c0_34] : memref<8x128xf32, #tpu.memory_space<vmem>>, vector<8x128xf32>
      %c0_35 = arith.constant 0 : index
      %c0_36 = arith.constant 0 : index
      %70 = vector.load %arg12[%c0_35, %c0_36] : memref<8x128xf32, #tpu.memory_space<vmem>>, vector<8x128xf32>
      tpu.vector_store %arg12[%c0_35, %c0_36], %69 {strides = array<i32>} : memref<8x128xf32, #tpu.memory_space<vmem>>, vector<8x128xf32>,
    } else {
    }
    %c0 = arith.constant 0 : index
    %c0_1 = arith.constant 0 : index
    %3 = vector.load %arg12[%c0, %c0_1] : memref<8x128xf32, #tpu.memory_space<vmem>>, vector<8x128xf32>
    %c8_i32 = arith.constant 8 : i32
    %4 = arith.muli %arg0, %c8_i32 : i32
    %5 = tpu.assume_multiple %4, 8 : i32
    %6 = arith.index_cast %5 : i32 to index
    %c0_2 = arith.constant 0 : index
    %7 = vector.load %arg11[%6, %c0_2] : memref<24x384xf32, #tpu.memory_space<vmem>>, vector<8x384xf32>
    %8 = arith.truncf %3 : vector<8x128xf32> to vector<8x128xbf16>
    %c0_3 = arith.constant 0 : index
    %c0_4 = arith.constant 0 : index
    %9 = vector.load %arg4[%c0_3, %c0_4] : memref<128x384xbf16, #tpu.memory_space<vmem>>, vector<128x384xbf16>
    %cst = arith.constant dense<0.000000e+00> : vector<8x384xf32>
    %10 = tpu.matmul %8, %9, %cst {dimension_numbers = #tpu.dot_dimension_numbers<[1], [0], [0], [1], [0, 0, 1, 1], [], []>} : vector<8x128xbf16>, vector<128x384xbf16>, vector<8x384xf32> -> vector<8x384xf32>
    %c0_5 = arith.constant 0 : index
    %c0_6 = arith.constant 0 : index
    %11 = vector.load %arg6[%c0_5, %c0_6] : memref<1x384xf32, #tpu.memory_space<vmem>>, vector<1x384xf32>
    %12 = vector.broadcast %11 : vector<1x384xf32> to vector<8x384xf32>
    %13 = arith.addf %10, %12 : vector<8x384xf32>
    %14 = vector.extract_strided_slice %7 {offsets = [0, 0], sizes = [8, 128], strides = [1, 1]} : vector<8x384xf32> to vector<8x128xf32>
    %15 = vector.extract_strided_slice %13 {offsets = [0, 0], sizes = [8, 128], strides = [1, 1]} : vector<8x384xf32> to vector<8x128xf32>
    %16 = arith.addf %14, %15 : vector<8x128xf32>
    %17 = arith.negf %16 : vector<8x128xf32>
    %18 = math.exp %17 : vector<8x128xf32>
    %cst_7 = arith.constant 1.000000e+00 : f32
    %19 = vector.broadcast %cst_7 : f32 to vector<8x128xf32>
    %20 = arith.addf %19, %18 : vector<8x128xf32>
    %21 = arith.divf %19, %20 : vector<8x128xf32>
    %22 = vector.extract_strided_slice %7 {offsets = [0, 128], sizes = [8, 128], strides = [1, 1]} : vector<8x384xf32> to vector<8x128xf32>
    %23 = vector.extract_strided_slice %13 {offsets = [0, 128], sizes = [8, 128], strides = [1, 1]} : vector<8x384xf32> to vector<8x128xf32>
    %24 = arith.addf %22, %23 : vector<8x128xf32>
    %25 = arith.negf %24 : vector<8x128xf32>
    %26 = math.exp %25 : vector<8x128xf32>
    %cst_8 = arith.constant 1.000000e+00 : f32
    %27 = vector.broadcast %cst_8 : f32 to vector<8x128xf32>
    %28 = arith.addf %27, %26 : vector<8x128xf32>
    %29 = arith.divf %27, %28 : vector<8x128xf32>
    %30 = vector.extract_strided_slice %7 {offsets = [0, 256], sizes = [8, 128], strides = [1, 1]} : vector<8x384xf32> to vector<8x128xf32>
    %31 = vector.extract_strided_slice %13 {offsets = [0, 256], sizes = [8, 128], strides = [1, 1]} : vector<8x384xf32> to vector<8x128xf32>
    %32 = arith.mulf %21, %31 : vector<8x128xf32>
    %33 = arith.addf %30, %32 : vector<8x128xf32>
    %34 = math.tanh %33 : vector<8x128xf32>
    %cst_9 = arith.constant 1.000000e+00 : f32
    %35 = vector.broadcast %cst_9 : f32 to vector<8x128xf32>
    %36 = arith.subf %35, %29 : vector<8x128xf32>
    %37 = arith.mulf %36, %34 : vector<8x128xf32>
    %38 = arith.mulf %29, %3 : vector<8x128xf32>
    %39 = arith.addf %37, %38 : vector<8x128xf32>
    %c0_10 = arith.constant 0 : index
    %c0_11 = arith.constant 0 : index
    %40 = vector.load %arg12[%c0_10, %c0_11] : memref<8x128xf32, #tpu.memory_space<vmem>>, vector<8x128xf32>
    tpu.vector_store %arg12[%c0_10, %c0_11], %39 {strides = array<i32>} : memref<8x128xf32, #tpu.memory_space<vmem>>, vector<8x128xf32>,
    %c0_12 = arith.constant 0 : index
    %c0_13 = arith.constant 0 : index
    %41 = vector.load %arg10[%c0_12, %c0_13] : memref<8x128xf32, #tpu.memory_space<vmem>>, vector<8x128xf32>
    tpu.vector_store %arg10[%c0_12, %c0_13], %39 {strides = array<i32>} : memref<8x128xf32, #tpu.memory_space<vmem>>, vector<8x128xf32>,
    %42 = arith.truncf %39 : vector<8x128xf32> to vector<8x128xbf16>
    %c0_14 = arith.constant 0 : index
    %c0_15 = arith.constant 0 : index
    %43 = vector.load %arg7[%c0_14, %c0_15] : memref<128x128xbf16, #tpu.memory_space<vmem>>, vector<128x128xbf16>
    %cst_16 = arith.constant dense<0.000000e+00> : vector<8x128xf32>
    %44 = tpu.matmul %42, %43, %cst_16 {dimension_numbers = #tpu.dot_dimension_numbers<[1], [0], [0], [1], [0, 0, 1, 1], [], []>} : vector<8x128xbf16>, vector<128x128xbf16>, vector<8x128xf32> -> vector<8x128xf32>
    %c0_17 = arith.constant 0 : index
    %c0_18 = arith.constant 0 : index
    %45 = vector.load %arg8[%c0_17, %c0_18] : memref<1x128xf32, #tpu.memory_space<vmem>>, vector<1x128xf32>
    %46 = vector.broadcast %45 : vector<1x128xf32> to vector<8x128xf32>
    %47 = arith.addf %44, %46 : vector<8x128xf32>
    %cst_19 = arith.constant dense<0xFF800000> : vector<8xf32>
    %48 = vector.multi_reduction <maximumf>, %47, %cst_19 [1] : vector<8x128xf32> to vector<8xf32>
    %49 = vector.shape_cast %48 : vector<8xf32> to vector<8x1xf32>
    %50 = vector.broadcast %49 : vector<8x1xf32> to vector<8x128xf32>
    %51 = arith.subf %47, %50 : vector<8x128xf32>
    %52 = math.exp %51 : vector<8x128xf32>
    %cst_20 = arith.constant dense<0.000000e+00> : vector<8xf32>
    %53 = vector.multi_reduction <add>, %52, %cst_20 [1] : vector<8x128xf32> to vector<8xf32>
    %54 = vector.shape_cast %53 : vector<8xf32> to vector<8x1xf32>
    %55 = math.log %54 : vector<8x1xf32>
    %56 = arith.addf %55, %49 : vector<8x1xf32>
    %57 = vector.broadcast %56 : vector<8x1xf32> to vector<8x128xf32>
    %58 = arith.subf %47, %57 : vector<8x128xf32>
    %c0_21 = arith.constant 0 : index
    %c0_22 = arith.constant 0 : index
    %c0_23 = arith.constant 0 : index
    %59 = vector.load %arg9[%c0_21, %c0_22, %c0_23] : memref<1x8x128xf32, #tpu.memory_space<vmem>>, vector<1x8x128xf32>
    %60 = vector.shape_cast %59 : vector<1x8x128xf32> to vector<8x128xf32>
    %61 = vector.shape_cast %58 : vector<8x128xf32> to vector<1x8x128xf32>
    tpu.vector_store %arg9[%c0_21, %c0_22, %c0_23], %61 {strides = array<i32>} : memref<1x8x128xf32, #tpu.memory_space<vmem>>, vector<1x8x128xf32>,
    return
  }
  func.func @transform_0(%arg0: i32) -> (i32, i32) {
    %c0_i32 = arith.constant 0 : i32
    %c0_i32_0 = arith.constant 0 : i32
    %c0_i32_1 = arith.constant 0 : i32
    return %c0_i32, %c0_i32_0 : i32, i32
  }
  func.func @transform_1(%arg0: i32) -> (i32, i32) {
    %c0_i32 = arith.constant 0 : i32
    %c0_i32_0 = arith.constant 0 : i32
    %c0_i32_1 = arith.constant 0 : i32
    return %c0_i32, %c0_i32_0 : i32, i32
  }
  func.func @transform_2(%arg0: i32) -> (i32, i32) {
    %c0_i32 = arith.constant 0 : i32
    %c0_i32_0 = arith.constant 0 : i32
    %c0_i32_1 = arith.constant 0 : i32
    return %c0_i32, %c0_i32_0 : i32, i32
  }
  func.func @transform_3(%arg0: i32) -> (i32, i32) {
    %c0_i32 = arith.constant 0 : i32
    %c0_i32_0 = arith.constant 0 : i32
    %c0_i32_1 = arith.constant 0 : i32
    return %c0_i32, %c0_i32_0 : i32, i32
  }
  func.func @transform_4(%arg0: i32) -> (i32, i32) {
    %c0_i32 = arith.constant 0 : i32
    %c0_i32_0 = arith.constant 0 : i32
    %c0_i32_1 = arith.constant 0 : i32
    return %c0_i32, %c0_i32_0 : i32, i32
  }
  func.func @transform_5(%arg0: i32) -> (i32, i32) {
    %c0_i32 = arith.constant 0 : i32
    %c0_i32_0 = arith.constant 0 : i32
    %c0_i32_1 = arith.constant 0 : i32
    return %c0_i32, %c0_i32_0 : i32, i32
  }
  func.func @transform_6(%arg0: i32) -> (i32, i32) {
    %c0_i32 = arith.constant 0 : i32
    %c0_i32_0 = arith.constant 0 : i32
    %c0_i32_1 = arith.constant 0 : i32
    return %c0_i32, %c0_i32_0 : i32, i32
  }
  func.func @transform_7(%arg0: i32) -> (i32, i32) {
    %c0_i32 = arith.constant 0 : i32
    %c0_i32_0 = arith.constant 0 : i32
    %c0_i32_1 = arith.constant 0 : i32
    return %c0_i32, %c0_i32_0 : i32, i32
  }
  func.func @transform_8(%arg0: i32) -> (i32, i32, i32) {
    %c0_i32 = arith.constant 0 : i32
    %c0_i32_0 = arith.constant 0 : i32
    %c0_i32_1 = arith.constant 0 : i32
    return %arg0, %c0_i32, %c0_i32_0 : i32, i32, i32
  }
  func.func @transform_9(%arg0: i32) -> (i32, i32) {
    %c0_i32 = arith.constant 0 : i32
    %c0_i32_0 = arith.constant 0 : i32
    %c0_i32_1 = arith.constant 0 : i32
    return %c0_i32, %c0_i32_0 : i32, i32
  }
}

</mosaic_0001>

<bundles_post_ra>
// kernel: _gru_seq_padded.1
= control target key start
LH: loop header
LB: loop body
LE: loop exit
PB: predicated region body
PF: predicated region fallthrough
CT: control target
= control target key end

     0   :  { %s1782_s0 = inlined_call_operand.vmem [shape: bf16[24,56], index: 0, kind: input, shape index: {}]   ;;  %s1783_s1 = inlined_call_operand.vmem [shape: f32[8,128], index: 1, kind: input, shape index: {}]   ;;  %s1784_s2 = inlined_call_operand.hbm [shape: bf16[56,384], index: 2, kind: input, shape index: {}]   ;;  %s1785_s3 = inlined_call_operand.hbm [shape: bf16[128,384], index: 3, kind: input, shape index: {}]   ;;  %s1786_s4 = inlined_call_operand.vmem [shape: f32[1,384], index: 4, kind: input, shape index: {}]   ;;  %s1787_s5 = inlined_call_operand.vmem [shape: f32[1,384], index: 5, kind: input, shape index: {}]   ;;  %s1788_s6 = inlined_call_operand.hbm [shape: bf16[128,128], index: 6, kind: input, shape index: {}]   ;;  %s1789_s7 = inlined_call_operand.vmem [shape: f32[1,128], index: 7, kind: input, shape index: {}]   ;;  %s1790_s8 = inlined_call_operand.hbm [shape: f32[3,8,128], index: 8, kind: output, shape index: {0}]   ;;  %s1791_s9 = inlined_call_operand.hbm [shape: f32[8,128], index: 9, kind: output, shape index: {1}]  }
   0x1   :  { %1793 = sst [smem:[#allocation19_spill]] %s1784_s2 }
   0x2   :  { %1794 = sst [smem:[#allocation20_spill]] %s1785_s3 }
   0x3   :  { %15 = vsyncpa [#allocation5], 0 }
   0x4   :  { %16 = vsyncpa [#allocation8], 0 }
   0x5   :  { %17 = vsyncpa [#allocation6], 0 }
   0x6   :  { %19 = vsyncpa [#allocation6 + $0x1], 0 }
   0x7   :  { %20 = vsyncpa [#allocation12], 0  ;;  %s1607_s30 = smov 0   ;;  %s1609_s10 = smov 0  }
   0x8   :  { %s1611_s11 = smov 0   ;;  %s1613_s12 = smov 0  }
   0x9 LB: > { %1795 = sst [smem:[#allocation17_spill]] %s1543_s11  ;;  %s1628_s13 = sadd.s32 4294967295, %s1547_s12   ;;  %s1547_s12 = sphi %s1613_s12, %s1807_s12   ;;  %s1543_s11 = sphi %s1611_s11, %s1804_s11   ;;  %s1539_s10 = sphi %s1609_s10, %s1806_s10   ;;  %s1535_s30 = sphi %s1607_s30, %s1805_s30  }
   0xa   : > { %s1017_s14 = sadd.s32 4294967294, %s1547_s12   ;;  %s1632_s15 = sadd.s32 1, %s1547_s12  }
   0xb   : > { %s201_s16 = sadd.s32 1, %s1543_s11  ;;  %s198_s17 = ssub.s32 %s1547_s12, %s1632_s15 }
   0xc   : > { %p211_p0 = scmp.ne.s32.totalorder %s1543_s11, %s1539_s10  ;;  %p199_p1 = scmp.eq.s32.totalorder %s198_s17, 0 }
   0xd   : > { %p212_p2 = scmp.eq.s32.totalorder %s1628_s13, 2  ;;  %p217_p3 = scmp.ne.s32.totalorder %s1539_s10, %s1535_s30 }
   0xe   : > { %p218_p4 = scmp.eq.s32.totalorder %s1017_s14, 2  ;;  %p1018_p7 = scmp.ge.s32.totalorder %s1547_s12, 1 }
   0xf   : > { %s1643_s18 = scalar_select %p199_p1, %s1543_s11, %s201_s16  }
  0x10   : > { %p1647_p5 = por %p212_p2, %p211_p0  ;;  %p1651_p6 = por %p218_p4, %p217_p3 }
  0x11   : > { %1796 = sst [smem:[#allocation18_spill]] %s1643_s18  ;;  %p246_p8 = scmp.lt.s32.totalorder %s1547_s12, 4 }
  0x12   : > { %p1019_p9 = scmp.ne.s32.totalorder %s1628_s13, 0  ;;  %p1291_p10 = scmp.eq.s32.totalorder %s1628_s13, 0 }
  0x13   : > { %p1659_p11 = pnand %p1018_p7, %p246_p8  ;;  %s1800_s3 = sld [smem:[#allocation20_spill]] }
  0x14   : > { %s1801_s2 = sld [smem:[#allocation19_spill]]  ;;  %s1549_s29 = smov [#allocation7]  }
  0x15   : > { %p1277_p12 = pneg %p1659_p11  ;;  %s279_s14 = sshll.u32 %s1549_s29, 4  ;;  %s280_s14 = int_to_ptr.vmem [resolvable:$true] %s279_s14 }
  0x16   : > { %s1550_s16 = smov 192   ;;  %s1551_s17 = smov 12  }
  0x17   : > { %p1673_p13 = pnand %p1291_p10, %p1277_p12  ;;  %s1552_s22 = smov [#allocation4]  }
  0x18   : > { %s265_s23 = sshll.u32 %s1552_s22, 4  ;;  %s1554_s29 = smov 64   ;;  %s266_s23 = int_to_ptr.vmem [resolvable:$true] %s265_s23 }
  0x19   : > { %s277_s24 = sshll.u32 %s1800_s3, 4  ;;  %s1553_s3 = smov [#allocation9]   ;;  %s278_s24 = int_to_ptr.hbm [resolvable:$true] %s277_s24 }
  0x1a   : > { %s263_s27 = sshll.u32 %s1801_s2, 4  ;;  %s297_s2 = sshll.u32 %s1788_s6, 4  ;;  %s264_s27 = int_to_ptr.hbm [resolvable:$true] %s263_s27  ;;  %s298_s2 = int_to_ptr.hbm [resolvable:$true] %s297_s2 }
  0x1b   : > { %1283 = dma.hbm_to_vmem [thread:$0]  (!%p1673_p13), %s278_s24, 3072, %s280_s14, [#allocation8], %s1550_s16, %s1550_s16, %s1551_s17  }
  0x1c   : > { %1280 = dma.hbm_to_vmem [thread:$0]  (!%p1673_p13), %s264_s27, 1344, %s266_s23, [#allocation5], %s1550_s16, %s1550_s16, %s1551_s17  }
  0x1d   : > { %s299_s18 = sshll.u32 %s1553_s3, 4  ;;  %s1555_s11 = smov 4   ;;  %s300_s18 = int_to_ptr.vmem [resolvable:$true] %s299_s18 }
  0x1e   : > { %1286 = dma.hbm_to_vmem [thread:$0]  (!%p1673_p13), %s298_s2, 1024, %s300_s18, [#allocation8], %s1554_s29, %s1554_s29, %s1555_s11  }
  0x1f   : > { %318 = sbr.rel (%p1659_p11) target bundleno = 825 (0x339), region = 52 }
  0x24   : > { %1518 = dma.done.wait (%p1291_p10), [#allocation5], 1344  }
  0x25   : > { %1520 = vsyncadd (%p1291_p10), [#allocation5], 4294965952 }
  0x26   : > { %1522 = dma.done.wait (%p1291_p10), [#allocation8], 4096  }
  0x27   : > { %1524 = vsyncadd (%p1291_p10), [#allocation8], 4294963200  ;;  %s355_s3 = sand.u32 1, %s1539_s10   ;;  %364 = sbr.rel (%p1019_p9) target bundleno = 221 (0xdd), region = 68 }
  0x28   : > { %s1699_s2 = sshll.u32 %s355_s3, 3 }
  0x29   : > { %s357_s11 = scalar_lea.vmem [#allocation10], %s1699_s2 }
  0x2c   : > { %v380_v0 = vld [vmem:[#allocation4 + $0x48] sm:$0xff]  ;;  %v381_v1 = vld [vmem:[#allocation4 + $0x50] sm:$0xf]  ;;  %vm461_vm0 = vcmask 1043456   ;;  %v1219_v5 = vld [vmem:[#allocation4 + $0x34] sm:$0xf] }
  0x2d   : > { %v431_v2 = vunpack.c.h.b16 %v380_v0  ;;  %v432_v3 = vunpack.c.l.b16 %v381_v1  ;;  %v430_v4 = vunpack.c.l.b16 %v380_v0  ;;  %v1060_v8 = vld [vmem:[#allocation4 + $0x3c] sm:$0xf0]  ;;  %v1066_v9 = vld [vmem:[#allocation4 + $0x38] sm:$0xf]  ;;  %v1221_v10 = vld [vmem:[#allocation4 + $0x40] sm:$0xf0] }
  0x2e   : > { %v1058_v12 = vld [vmem:[#allocation4 + $0x30] sm:$0xf]  ;;  %v1220_v13 = vld [vmem:[#allocation4 + $0x38] sm:$0xf0]  ;;  %v1063_v17 = vor.u32 %v1219_v5, %v1060_v8  ;;  %v1067_v18 = vor.u32 %v1221_v10, %v1066_v9  ;;  %v1048_v20 = vld [vmem:[#allocation4 + $0x24] sm:$0xf0] }
  0x2f   : > { %v443_v6 = vpack.c.b16 %v431_v2, %v431_v2  ;;  %v444_v7 = vpack.c.b16 %v432_v3, %v432_v3  ;;  %v442_v11 = vpack.c.b16 %v430_v4, %v430_v4  ;;  %v1216_v19 = vld [vmem:[#allocation4 + $0x1c] sm:$0xf]  ;;  %v1054_v21 = vld [vmem:[#allocation4 + $0x20] sm:$0xf]  ;;  %v1218_v22 = vld [vmem:[#allocation4 + $0x28] sm:$0xf0]  ;;  %v1059_v23 = vor.u32 %v1220_v13, %v1058_v12 }
  0x30   : > { %v1046_v24 = vld [vmem:[#allocation4 + $0x18] sm:$0xf]  ;;  %v1217_v25 = vld [vmem:[#allocation4 + $0x20] sm:$0xf0]  ;;  %v1051_v26 = vor.u32 %v1216_v19, %v1048_v20  ;;  %v1055_v27 = vor.u32 %v1218_v22, %v1054_v21  ;;  %v1036_v29 = vld [vmem:[#allocation4 + $0xc] sm:$0xf0] }
  0x31   : > { %v466_v14 = vsel %vm461_vm0, %v443_v6, 0  ;;  %v469_v15 = vsel %vm461_vm0, %v444_v7, 0  ;;  %v463_v16 = vsel %vm461_vm0, %v442_v11, 0  ;;  %v1213_v28 = vld [vmem:[#allocation4 + $0x4] sm:$0xf]  ;;  %v1047_v32 = vor.u32 %v1217_v25, %v1046_v24  ;;  %v1212_v40 = vld [vmem:[%s1782_s0] sm:$0xff] }
  0x32   : > { %493 = vmatpush.bf16.msra.mxu1 %v466_v14  ;;  %511 = vmatpush.bf16.msra.mxu2 %v469_v15  ;;  %v1042_v30 = vld [vmem:[#allocation4 + $0x8] sm:$0xf]  ;;  %v1215_v31 = vld [vmem:[#allocation4 + $0x10] sm:$0xf0]  ;;  %v367_v33 = vld [vmem:[%s1782_s0 + $0x8] sm:$0xf]  ;;  %v1039_v36 = vor.u32 %v1213_v28, %v1036_v29 }
  0x33   : > { %1255 = vmatpush.bf16.msra.mxu3 %v463_v16  ;;  %475 = vmatpush.bf16.msra.mxu0 %v463_v16  ;;  %v1034_v34 = vld [vmem:[#allocation4] sm:$0xf]  ;;  %v1214_v35 = vld [vmem:[#allocation4 + $0x8] sm:$0xf0]  ;;  %v1043_v37 = vor.u32 %v1215_v31, %v1042_v30  ;;  %v395_v38 = vunpack.c.l.b16 %v367_v33  ;;  %vm454_vm1 = vcmask 457728   ;;  %v534_v44 = vld [vmem:[%s1783_s1] sm:$0xff] }
  0x34   : > { %v1035_v39 = vor.u32 %v1214_v35, %v1034_v34  ;;  %v382_v42 = vld [vmem:[%s1786_s4] sm:$0x7]  ;;  %535 = vst [vmem:[#allocation3] sm:$0xff] %v534_v44 }
  0x35   : > { %v397_v41 = vpack.c.b16 %v395_v38, %v395_v38  ;;  %v385_v43 = vperm.slane %v382_v42, 1  ;;  %v384_v45 = vperm.slane %v382_v42, 0  ;;  %v386_v50 = vperm.slane %v382_v42, 2 }
  0x36   : > { %494 = vmatpush.bf16.msra.mxu1 %v1063_v17  ;;  %512 = vmatpush.bf16.msra.mxu2 %v1067_v18 }
  0x37   : > { %1256 = vmatpush.bf16.msra.mxu3 %v1059_v23  ;;  %476 = vmatpush.bf16.msra.mxu0 %v1059_v23 }
  0x3a   : > { %495 = vmatpush.bf16.msra.mxu1 %v1051_v26  ;;  %513 = vmatpush.bf16.msra.mxu2 %v1055_v27 }
  0x3b   : > { %1257 = vmatpush.bf16.msra.mxu3 %v1047_v32  ;;  %477 = vmatpush.bf16.msra.mxu0 %v1047_v32 }
  0x3e   : > { %496 = vmatpush.bf16.msra.mxu1 %v1039_v36  ;;  %514 = vmatpush.bf16.msra.mxu2 %v1043_v37 }
  0x3f   : > { %1258 = vmatpush.bf16.msra.mxu3 %v1035_v39  ;;  %478 = vmatpush.bf16.msra.mxu0 %v1035_v39 }
  0x41   : > { %1070 = vmatmul.msk.bf16.vlgmr.msra.gmra.mxu1 %vm454_vm1, %v1212_v40  ;;  %1072 = vmatmul.msk.bf16.vlgmr.msra.gmra.mxu2 %vm454_vm1, %v1212_v40 }
  0x42   : > { %1069 = vmatmul.msk.bf16.vlgmr.msra.gmra.mxu3 %vm454_vm1, %v397_v41  ;;  %1068 = vmatmul.msk.bf16.vlgmr.msra.gmra.mxu0 %vm454_vm1, %v1212_v40 }
  0x51   : > { %1071 = vmatmul.msk.bf16.gmra.mxu1 %vm454_vm1, %v397_v41  ;;  %1073 = vmatmul.msk.bf16.gmra.mxu2 %vm454_vm1, %v397_v41 }
  0xbe   : > { %v498_v46 = vpop.f32.mrf.mxu1 }
  0xbf   : > { %v499_v47 = vadd.f32 %v498_v46, %v385_v43  ;;  %v480_v48 = vpop.f32.mrf.mxu0 }
  0xc0   : > { %v481_v49 = vadd.f32 %v480_v48, %v384_v45 }
  0xc1   : > { %526 = vst [vmem:[#allocation2 + $0x8] sm:$0xff] %v499_v47 }
  0xc2   : > { %525 = vst [vmem:[#allocation2] sm:$0xff] %v481_v49 }
  0xc4   : > { %v516_v51 = vpop.f32.mrf.mxu2 }
  0xc5   : > { %v517_v52 = vadd.f32 %v516_v51, %v386_v50  ;;  %v485_v53 = vpop.f32.mrf.mxu3 }
  0xc6   : > { %v500_v54 = vpop.f32.mrf.mxu1  ;;  %v486_v55 = vadd.f32 %v485_v53, %v384_v45 }
  0xc7   : > { %527 = vst [vmem:[#allocation2 + $0x10] sm:$0xff] %v517_v52  ;;  %v501_v56 = vadd.f32 %v500_v54, %v385_v43  ;;  %v482_v57 = vpop.f32.mrf.mxu0 }
  0xc8   : > { %531 = vst [vmem:[#allocation2 + $0x30] sm:$0xff] %v486_v55  ;;  %v483_v58 = vadd.f32 %v482_v57, %v384_v45 }
  0xc9   : > { %529 = vst [vmem:[#allocation2 + $0x20] sm:$0xff] %v501_v56 }
  0xca   : > { %528 = vst [vmem:[#allocation2 + $0x18] sm:$0xff] %v483_v58 }
  0xcc   : > { %v518_v59 = vpop.f32.mrf.mxu2 }
  0xcd   : > { %v519_v60 = vadd.f32 %v518_v59, %v386_v50  ;;  %v487_v61 = vpop.f32.mrf.mxu3 }
  0xce   : > { %v503_v62 = vpop.f32.mrf.mxu1 }
  0xcf   : > { %530 = vst [vmem:[#allocation2 + $0x28] sm:$0xff] %v519_v60  ;;  %v504_v63 = vadd.f32 %v503_v62, %v385_v43 }
  0xd1   : > { %532 = vst [vmem:[#allocation2 + $0x38] sm:$0xff] %v504_v63 }
  0xd4   : > { %v521_v0 = vpop.f32.mrf.mxu2 }
  0xd5   : > { %v522_v1 = vadd.f32 %v521_v0, %v386_v50 }
  0xd6   : > { %v505_v2 = vpop.f32.mrf.mxu1 }
  0xd7   : > { %533 = vst [vmem:[#allocation2 + $0x40] sm:$0xff] %v522_v1 }
  0xdc   : > { %v523_v3 = vpop.f32.mrf.mxu2 }
  0xdd PF: > { %v1162_v4 = vld [vmem:[#allocation7 + $0xa8] sm:$0xf]  ;;  %v1245_v5 = vld [vmem:[#allocation7 + $0xb0] sm:$0xf0]  ;;  %v1244_v6 = vld [vmem:[#allocation7 + $0xac] sm:$0xf] }
  0xde   : > { %v1163_v7 = vor.u32 %v1245_v5, %v1162_v4  ;;  %v1164_v8 = vld [vmem:[#allocation7 + $0xb4] sm:$0xf0]  ;;  %v1150_v9 = vld [vmem:[#allocation7 + $0x90] sm:$0xf]  ;;  %v1242_v10 = vld [vmem:[#allocation7 + $0x98] sm:$0xf0] }
  0xdf   : > { %v1167_v11 = vor.u32 %v1244_v6, %v1164_v8  ;;  %v1241_v12 = vld [vmem:[#allocation7 + $0x94] sm:$0xf]  ;;  %v1152_v13 = vld [vmem:[#allocation7 + $0x9c] sm:$0xf0]  ;;  %v1151_v14 = vor.u32 %v1242_v10, %v1150_v9  ;;  %v1138_v16 = vld [vmem:[#allocation7 + $0x78] sm:$0xf] }
  0xe0   : > { %715 = vmatpush.bf16.msra.mxu0 %v1163_v7  ;;  %v1155_v15 = vor.u32 %v1241_v12, %v1152_v13  ;;  %v1239_v17 = vld [vmem:[#allocation7 + $0x80] sm:$0xf0]  ;;  %v1238_v18 = vld [vmem:[#allocation7 + $0x7c] sm:$0xf]  ;;  %v1140_v19 = vld [vmem:[#allocation7 + $0x84] sm:$0xf0] }
  0xe1   : > { %728 = vmatpush.bf16.msra.mxu1 %v1167_v11  ;;  %v1170_v20 = vld [vmem:[#allocation7 + $0xb0] sm:$0xf]  ;;  %v1139_v21 = vor.u32 %v1239_v17, %v1138_v16  ;;  %v1246_v22 = vld [vmem:[#allocation7 + $0xb8] sm:$0xf0]  ;;  %v1143_v23 = vor.u32 %v1238_v18, %v1140_v19  ;;  %v1126_v24 = vld [vmem:[#allocation7 + $0x60] sm:$0xf] }
  0xe2   : > { %v1236_v25 = vld [vmem:[#allocation7 + $0x68] sm:$0xf0]  ;;  %v1171_v26 = vor.u32 %v1246_v22, %v1170_v20  ;;  %v1158_v27 = vld [vmem:[#allocation7 + $0x98] sm:$0xf]  ;;  %v1235_v28 = vld [vmem:[#allocation7 + $0x64] sm:$0xf] }
  0xe3   : > { %v1128_v29 = vld [vmem:[#allocation7 + $0x6c] sm:$0xf0]  ;;  %v1243_v30 = vld [vmem:[#allocation7 + $0xa0] sm:$0xf0]  ;;  %v1127_v32 = vor.u32 %v1236_v25, %v1126_v24  ;;  %v1146_v33 = vld [vmem:[#allocation7 + $0x80] sm:$0xf] }
  0xe4   : > { %716 = vmatpush.bf16.msra.mxu0 %v1151_v14  ;;  %741 = vmatpush.bf16.msra.mxu2 %v1171_v26  ;;  %v1159_v31 = vor.u32 %v1243_v30, %v1158_v27  ;;  %v1240_v34 = vld [vmem:[#allocation7 + $0x88] sm:$0xf0]  ;;  %v1131_v35 = vor.u32 %v1235_v28, %v1128_v29  ;;  %v1114_v36 = vld [vmem:[#allocation7 + $0x48] sm:$0xf]  ;;  %v1233_v37 = vld [vmem:[#allocation7 + $0x50] sm:$0xf0] }
  0xe5   : > { %729 = vmatpush.bf16.msra.mxu1 %v1155_v15  ;;  %v1232_v38 = vld [vmem:[#allocation7 + $0x4c] sm:$0xf]  ;;  %v1116_v39 = vld [vmem:[#allocation7 + $0x54] sm:$0xf0]  ;;  %v1147_v40 = vor.u32 %v1240_v34, %v1146_v33  ;;  %v1115_v41 = vor.u32 %v1233_v37, %v1114_v36  ;;  %v1134_v42 = vld [vmem:[#allocation7 + $0x68] sm:$0xf] }
  0xe6   : > { %v1237_v43 = vld [vmem:[#allocation7 + $0x70] sm:$0xf0]  ;;  %v1119_v44 = vor.u32 %v1232_v38, %v1116_v39  ;;  %v1102_v45 = vld [vmem:[#allocation7 + $0x30] sm:$0xf]  ;;  %v1230_v46 = vld [vmem:[#allocation7 + $0x38] sm:$0xf0] }
  0xe7   : > { %v1229_v47 = vld [vmem:[#allocation7 + $0x34] sm:$0xf]  ;;  %v1104_v48 = vld [vmem:[#allocation7 + $0x3c] sm:$0xf0]  ;;  %v1135_v49 = vor.u32 %v1237_v43, %v1134_v42  ;;  %v1103_v50 = vor.u32 %v1230_v46, %v1102_v45  ;;  %v1122_v51 = vld [vmem:[#allocation7 + $0x50] sm:$0xf] }
  0xe8   : > { %717 = vmatpush.bf16.msra.mxu0 %v1139_v21  ;;  %742 = vmatpush.bf16.msra.mxu2 %v1159_v31  ;;  %v1234_v52 = vld [vmem:[#allocation7 + $0x58] sm:$0xf0]  ;;  %v1107_v53 = vor.u32 %v1229_v47, %v1104_v48  ;;  %v1090_v54 = vld [vmem:[#allocation7 + $0x18] sm:$0xf]  ;;  %v1227_v55 = vld [vmem:[#allocation7 + $0x20] sm:$0xf0] }
  0xe9   : > { %730 = vmatpush.bf16.msra.mxu1 %v1143_v23  ;;  %v1226_v56 = vld [vmem:[#allocation7 + $0x1c] sm:$0xf]  ;;  %v1092_v57 = vld [vmem:[#allocation7 + $0x24] sm:$0xf0]  ;;  %v1123_v58 = vor.u32 %v1234_v52, %v1122_v51  ;;  %v1091_v59 = vor.u32 %v1227_v55, %v1090_v54  ;;  %v1110_v60 = vld [vmem:[#allocation7 + $0x38] sm:$0xf] }
  0xea   : > { %v1231_v61 = vld [vmem:[#allocation7 + $0x40] sm:$0xf0]  ;;  %v1095_v62 = vor.u32 %v1226_v56, %v1092_v57  ;;  %v1078_v63 = vld [vmem:[#allocation7] sm:$0xf]  ;;  %v1224_v0 = vld [vmem:[#allocation7 + $0x8] sm:$0xf0] }
  0xeb   : > { %v1223_v1 = vld [vmem:[#allocation7 + $0x4] sm:$0xf]  ;;  %v1080_v2 = vld [vmem:[#allocation7 + $0xc] sm:$0xf0]  ;;  %v1111_v3 = vor.u32 %v1231_v61, %v1110_v60  ;;  %v1079_v4 = vor.u32 %v1224_v0, %v1078_v63  ;;  %v1098_v6 = vld [vmem:[#allocation7 + $0x20] sm:$0xf] }
  0xec   : > { %718 = vmatpush.bf16.msra.mxu0 %v1127_v32  ;;  %743 = vmatpush.bf16.msra.mxu2 %v1147_v40  ;;  %v1716_v5 = vld [vmem:[#allocation3] sm:$0xff]  ;;  %v1228_v7 = vld [vmem:[#allocation7 + $0x28] sm:$0xf0]  ;;  %v1083_v8 = vor.u32 %v1223_v1, %v1080_v2  ;;  %v1225_v12 = vld [vmem:[#allocation7 + $0x10] sm:$0xf0]  ;;  %s1074_s22 = sshll.u32 %s1628_s13, 3 }
  0xed   : > { %731 = vmatpush.bf16.msra.mxu1 %v1131_v35  ;;  %v546_v9 = vpack.c.bf16 %v1716_v5, %v1716_v5  ;;  %v1099_v10 = vor.u32 %v1228_v7, %v1098_v6  ;;  %v1086_v11 = vld [vmem:[#allocation7 + $0x8] sm:$0xf]  ;;  %v1254_v14 = vld [vmem:[#allocation9 + $0x38] sm:$0xff]  ;;  %s538_s23 = sshra.s32 %s1074_s22, 3  ;;  %v1253_v15 = vld [vmem:[#allocation9 + $0x30] sm:$0xff]  ;;  %s1556_s27 = smov [#allocation11]  }
  0xee   : > { %v1087_v13 = vor.u32 %v1225_v12, %v1086_v11  ;;  %872 = vmatpush.bf16.msra.mxu3 %v1254_v14  ;;  %s1222_s25 = smul.u32 24, %s538_s23  ;;  %v579_v16 = vld [vmem:[%s1787_s5] sm:$0x7]  ;;  %v1252_v17 = vld [vmem:[#allocation9 + $0x28] sm:$0xff]  ;;  %v1251_v20 = vld [vmem:[#allocation9 + $0x20] sm:$0xff]  ;;  %s922_s28 = sshll.u32 %s1556_s27, 4  ;;  %s923_s28 = int_to_ptr.vmem [resolvable:$true] %s922_s28 }
  0xef   : > { %v581_v18 = vperm.slane %v579_v16, 0  ;;  %v582_v19 = vperm.slane %v579_v16, 1  ;;  %v1250_v27 = vld [vmem:[#allocation9 + $0x18] sm:$0xff]  ;;  %v1249_v31 = vld [vmem:[#allocation9 + $0x10] sm:$0xff]  ;;  %v1248_v34 = vld [vmem:[#allocation9 + $0x8] sm:$0xff]  ;;  %v583_v47 = vperm.slane %v579_v16, 2  ;;  %s908_s26 = scalar_lea.hbm %s1790_s8, %s1074_s22 }
  0xf0   : > { %719 = vmatpush.bf16.msra.mxu0 %v1115_v41  ;;  %744 = vmatpush.bf16.msra.mxu2 %v1135_v49  ;;  %s1726_s18 = scalar_lea.vmem [#allocation2], %s1222_s25  ;;  %v1247_v36 = vld [vmem:[#allocation9] sm:$0xff]  ;;  %v1340_v11 = vld [vmem:[%s1789_s7] ss:$0 sm:$0xff]  ;;  %s924_s17 = sshll.u32 %s1791_s9, 4  ;;  %s925_s17 = int_to_ptr.hbm [resolvable:$true] %s924_s17 }
  0xf1   : > { %732 = vmatpush.bf16.msra.mxu1 %v1119_v44  ;;  %v543_v21 = vld [vmem:[%s1726_s18] sm:$0xff]  ;;  %v544_v24 = vld [vmem:[%s1726_s18 + $0x8] sm:$0xff]  ;;  %s910_s29 = sshll.u32 %s357_s11, 4  ;;  %s898_s21 = scalar_lea.sflag [#allocation6], %s355_s3  ;;  %s911_s29 = int_to_ptr.vmem [resolvable:$true] %s910_s29 }
  0xf2   : > { %873 = vmatpush.bf16.msra.mxu3 %v1253_v15  ;;  %s1493_s14 = scalar_lea.hbm %s1790_s8, 24 }
  0xf4   : > { %720 = vmatpush.bf16.msra.mxu0 %v1103_v50  ;;  %745 = vmatpush.bf16.msra.mxu2 %v1123_v58  ;;  %v545_v58 = vld [vmem:[%s1726_s18 + $0x10] sm:$0xff]  ;;  %s912_s18 = sshll.u32 %s908_s26, 4  ;;  %s913_s18 = int_to_ptr.hbm [resolvable:$true] %s912_s18 }
  0xf5   : > { %733 = vmatpush.bf16.msra.mxu1 %v1107_v53  ;;  %s1487_s24 = sshra.s32 %s913_s18, 4  ;;  %s1488_s24 = int_to_ptr.hbm [resolvable:$true] %s1487_s24 }
  0xf6   : > { %874 = vmatpush.bf16.msra.mxu3 %v1252_v17  ;;  %s1489_s27 = scalar_lea.hbm %s1488_s24, 8  ;;  %p1494_p4 = scmp.lt.s32.totalorder %s1488_s24, %s1790_s8 }
  0xf7   : > { %p1490_p0 = scmp.ne.s32.totalorder %s1488_s24, %s1489_s27  ;;  %p1495_p7 = scmp.lt.s32.totalorder %s1493_s14, %s1489_s27 }
  0xf8   : > { %721 = vmatpush.bf16.msra.mxu0 %v1091_v59  ;;  %746 = vmatpush.bf16.msra.mxu2 %v1111_v3 }
  0xf9   : > { %734 = vmatpush.bf16.msra.mxu1 %v1095_v62  ;;  %p1491_p1 = pnand %p1490_p0, %p1647_p5  ;;  %p1496_p8 = por %p1495_p7, %p1494_p4 }
  0xfa   : > { %875 = vmatpush.bf16.msra.mxu3 %v1251_v20 }
  0xfb   : > { %p1492_p3 = pneg %p1491_p1 }
  0xfc   : > { %722 = vmatpush.bf16.msra.mxu0 %v1079_v4  ;;  %747 = vmatpush.bf16.msra.mxu2 %v1099_v10 }
  0xfd   : > { %735 = vmatpush.bf16.msra.mxu1 %v1083_v8  ;;  %p1497_p9 = pnand %p1496_p8, %p1492_p3 }
  0xfe   : > { %876 = vmatpush.bf16.msra.mxu3 %v1250_v27 }
  0xff   : > { %723 = vmatmul.bf16.vlgmr.msra.gmra.mxu0 %v546_v9 }
 0x100   : > { %736 = vmatmul.bf16.vlgmr.msra.gmra.mxu1 %v546_v9  ;;  %748 = vmatpush.bf16.msra.mxu2 %v1087_v13 }
 0x102   : > { %877 = vmatpush.bf16.msra.mxu3 %v1249_v31 }
 0x103   : > { %749 = vmatmul.bf16.vlgmr.msra.gmra.mxu2 %v546_v9 }
 0x106   : > { %878 = vmatpush.bf16.msra.mxu3 %v1248_v34 }
 0x10a   : > { %879 = vmatpush.bf16.msra.mxu3 %v1247_v36 }
 0x17c   : > { %v724_v22 = vpop.f32.mrf.mxu0 }
 0x17d   : > { %v725_v23 = vadd.f32 %v724_v22, %v581_v18  ;;  %v737_v25 = vpop.f32.mrf.mxu1 }
 0x17e   : > { %v738_v26 = vadd.f32 %v737_v25, %v582_v19 }
 0x17f   : > { %v754_v28 = vadd.f32 %v725_v23, %v543_v21 }
 0x180   : > { %v774_v29 = vadd.f32 %v738_v26, %v544_v24 }
 0x181   : > { %v1172_v30 = vmul.f32 -1.442695, %v754_v28 }
 0x182   : > { %v1173_v32 = vmul.f32 -1.442695, %v774_v29 }
 0x183   : > { %1341 = vpow2.f32 %v1172_v30 }
 0x184   : > { %1343 = vpow2.f32 %v1173_v32  ;;  %v726_v33 = vpop.f32.mrf.mxu0 }
 0x185   : > { %v739_v35 = vpop.f32.mrf.mxu1 }
 0x186   : > { %v750_v38 = vpop.f32.mrf.mxu2 }
 0x187   : > { %v751_v54 = vadd.f32 %v750_v38, %v583_v47 }
 0x189   : > { %v1342_v37 = vpop.eup %1341 }
 0x18a   : > { %v1344_v39 = vpop.eup %1343  ;;  %v758_v40 = vadd.f32 1.0, %v1342_v37 }
 0x18b   : > { %v778_v41 = vadd.f32 1.0, %v1344_v39 }
 0x18c   : > { %1345 = vrcp.f32 %v758_v40  ;;  %v770_v50 = vand.u32 2147483648, %v758_v40  ;;  %v768_v52 = vand.u32 2147483647, %v758_v40  ;;  %vm764_vm3 = vweird.f32 %v758_v40 }
 0x18d   : > { %1347 = vrcp.f32 %v778_v41  ;;  %vm784_vm6 = vweird.f32 %v778_v41  ;;  %v790_v62 = vand.u32 2147483648, %v778_v41  ;;  %v788_v63 = vand.u32 2147483647, %v778_v41 }
 0x18e   : > { %v752_v42 = vpop.f32.mrf.mxu2  ;;  %v771_v56 = vor.u32 1.1754944e-38, %v770_v50  ;;  %vm769_vm5 = vcmp.eq.f32.partialorder %v768_v52, 8.507059e+37 }
 0x18f   : > { %v791_v2 = vor.u32 1.1754944e-38, %v790_v62  ;;  %vm789_vm9 = vcmp.eq.f32.partialorder %v788_v63, 8.507059e+37 }
 0x192   : > { %v1346_v43 = vpop.eup %1345 }
 0x193   : > { %v1348_v44 = vpop.eup %1347  ;;  %v760_v45 = vmul.f32 %v1346_v43, %v758_v40  ;;  %vm765_vm2 = vweird.f32 %v1346_v43 }
 0x194   : > { %v780_v46 = vmul.f32 %v1348_v44, %v778_v41  ;;  %vm766_vm4 = vmor %vm764_vm3, %vm765_vm2  ;;  %vm785_vm7 = vweird.f32 %v1348_v44 }
 0x195   : > { %v761_v48 = vsub.f32 1.0, %v760_v45  ;;  %vm786_vm8 = vmor %vm784_vm6, %vm785_vm7 }
 0x196   : > { %v781_v49 = vsub.f32 1.0, %v780_v46 }
 0x197   : > { %v762_v51 = vmul.f32 %v1346_v43, %v761_v48 }
 0x198   : > { %v782_v53 = vmul.f32 %v1348_v44, %v781_v49 }
 0x199   : > { %v763_v55 = vadd.f32 %v1346_v43, %v762_v51 }
 0x19a   : > { %v783_v60 = vadd.f32 %v1348_v44, %v782_v53 }
 0x19b   : > { %v767_v57 = vsel %vm766_vm4, %v1346_v43, %v763_v55 }
 0x19c   : > { %v772_v59 = vsel %vm769_vm5, %v771_v56, %v767_v57  ;;  %v787_v1 = vsel %vm786_vm8, %v1348_v44, %v783_v60 }
 0x19d   : > { %v794_v61 = vmul.f32 %v772_v59, %v751_v54  ;;  %v792_v3 = vsel %vm789_vm9, %v791_v2, %v787_v1 }
 0x19e   : > { %v797_v4 = vsub.f32 1.0, %v792_v3  ;;  %v799_v8 = vmul.f32 %v792_v3, %v1716_v5 }
 0x19f   : > { %v795_v0 = vadd.f32 %v794_v61, %v545_v58 }
 0x1a1   : > { %1349 = vtanh.f32 %v795_v0 }
 0x1a7   : > { %v1350_v6 = vpop.eup %1349 }
 0x1a8   : > { %v798_v7 = vmul.f32 %v1350_v6, %v797_v4 }
 0x1aa   : > { %v800_v9 = vadd.f32 %v799_v8, %v798_v7 }
 0x1ac   : > { %801 = vst [vmem:[#allocation3] sm:$0xff] %v800_v9  ;;  %v803_v10 = vpack.c.bf16 %v800_v9, %v800_v9 }
 0x1ad   : > { %802 = vst [vmem:[#allocation11] sm:$0xff] %v800_v9 }
 0x1ae   : > { %880 = vmatmul.bf16.vlgmr.msra.gmra.mxu3 %v803_v10  ;;  %1273 = dma.vmem_to_hbm [thread:$0]  (%p212_p2), %s923_s28, 128, %s925_s17, [#allocation12]  }
 0x231   : > { %v881_v12 = vpop.f32.mrf.mxu3 }
 0x232   : > { %v882_v13 = vadd.f32 %v1340_v11, %v881_v12 }
 0x234   : > { %885 = vmax.xlane.f32.xlu0 %v882_v13 }
 0x239   : > { %v883_v14 = vpop.f32.mrf.mxu3 }
 0x2a7   : > { %v886_v15 = vpop.xlane.xlu0 %885 }
 0x2a8   : > { %v887_v16 = vsub.f32 %v882_v13, %v886_v15 }
 0x2aa   : > { %v888_v17 = vmul.f32 1.442695, %v887_v16 }
 0x2ac   : > { %1351 = vpow2.f32 %v888_v17 }
 0x2b2   : > { %v1352_v5 = vpop.eup %1351 }
 0x2b3   : > { %890 = vadd.xlane.f32.xlu0 %v1352_v5 }
 0x326   : > { %v891_v18 = vpop.xlane.xlu0 %890 }
 0x327   : > { %1353 = vlog2.f32 %v891_v18 }
 0x32d   : > { %v1354_v19 = vpop.eup %1353 }
 0x32e   : > { %v893_v20 = vmul.f32 0.6931472, %v1354_v19 }
 0x330   : > { %v894_v21 = vadd.f32 %v893_v20, %v886_v15 }
 0x332   : > { %v895_v22 = vsub.f32 %v882_v13, %v894_v21 }
 0x334   : > { %896 = vst [vmem:[%s357_s11] sm:$0xff] %v895_v22 }
 0x335   : > { %1500 = shalt.err (!%p1497_p9)
}
 0x336   : > { %1271 = dma.vmem_to_hbm [thread:$0]  (%p1647_p5), %s911_s29, 128, %s913_s18, %s898_s21  }
 0x337   : > { %1526 = dma.done.wait (%p212_p2), [#allocation12], 128  }
 0x338   : > { %1528 = vsyncadd (%p212_p2), [#allocation12], 4294967168 }
 0x339 PF: > { %p1299_p10 = scmp.ge.s32.totalorder %s1547_s12, 2  ;;  %s941_s3 = sand.u32 1, %s1535_s30  }
 0x33a   : > { %s942_s2 = scalar_lea.sflag [#allocation6], %s941_s3 }
 0x33b   : > { %p1288_p11 = pnand %p1299_p10, %p1651_p6 }
 0x33d   : > { %p1289_p12 = pneg %p1288_p11 }
 0x33f   : > { %1530 = dma.done.wait (%p1289_p12), %s942_s2, 128  }
 0x340   : > { %1532 = vsyncadd (%p1289_p12), %s942_s2, 4294967168  ;;  %s1803_s19 = sld [smem:[#allocation17_spill]]  ;;  %p23_p5 = scmp.ge.s32.totalorder %s1632_s15, 5  }
 0x341   : > { %s1804_s11 = sld [smem:[#allocation18_spill]]  ;;  %s1805_s30 = smov %s1539_s10 }
 0x342   : > { %s1807_s12 = smov %s1632_s15  ;;  %25 = sbr.rel (!%p23_p5) target bundleno = 9 (0x9), region = 110 }
 0x346   : > { %s1806_s10 = smov %s1803_s19 }
 0x347   :  { %948 = vsyncpa [#allocation5], 1 }
 0x348   :  { %950 = vsyncpa [#allocation5 + $0x1], 1 }
 0x349   :  { %951 = vsyncpa [#allocation8], 1 }
 0x34a   :  { %952 = vsyncpa [#allocation6], 1 }
 0x34b   :  { %954 = vsyncpa [#allocation6 + $0x1], 1 }
 0x34c   :  { %955 = vsyncpa [#allocation12], 1 }

</bundles_post_ra>
